<compile_context>
chip_gen: v7x
topology: tpu7x:2x2x1
jax: 0.10.0
libtpu: 0.0.40
codegen_flags: <defaults>
</compile_context>

<pallas_src>
import jax
import jax.numpy as jnp
from jax.experimental import pallas as pl
from jax.experimental.pallas import tpu as pltpu


def edge_kernel(xi_ref, yi_ref, embT_ref, w1T_ref, b1_ref, w2_ref, b2_ref, o_ref):
    # xi/yi:   (1, TN) int32 indices for this tile (lane-dense)
    # embT:    (E, V)  resident embedding table (transposed)
    # w1T:     (H, E)  resident, b1: (H, 1), w2: (H, 1), b2: (1, 1) in SMEM
    # o:       (1, TN) lane-dense output tile
    V = embT_ref.shape[1]
    TN = xi_ref.shape[1]

    # In-kernel embedding gather via one-hot matmul (keeps everything on-chip).
    row_iota = jax.lax.broadcasted_iota(jnp.int32, (V, TN), 0)          # (V, TN)
    oh_x = (row_iota == xi_ref[...]).astype(jnp.float32)                # (V, TN)
    oh_y = (row_iota == yi_ref[...]).astype(jnp.float32)                # (V, TN)
    exT = jnp.dot(embT_ref[...], oh_x, preferred_element_type=jnp.float32)  # (E, TN)
    eyT = jnp.dot(embT_ref[...], oh_y, preferred_element_type=jnp.float32)  # (E, TN)

    # Elementwise product + first linear layer (batch on lanes).
    h = jnp.dot(w1T_ref[...], exT * eyT, preferred_element_type=jnp.float32)  # (H, TN)
    h = jnp.maximum(h + b1_ref[...], 0.0)                                     # ReLU

    # Second linear layer (H -> 1): VPU multiply + sublane (XLU) reduction.
    z = jnp.sum(h * w2_ref[...], axis=0, keepdims=True) + b2_ref[0, 0]        # (1, TN)

    # Sigmoid: exp on EUP, approx reciprocal on EUP -> epilogue is essentially free.
    o_ref[...] = pl.reciprocal(1.0 + jnp.exp(-z), approx=True)


def _round_up(x, m):
    return (x + m - 1) // m * m


def edge_model_forward(x_idx, y_idx, emb, w1, b1, w2, b2, *, tile_n=1024):
    """x_idx, y_idx: int32 (N,); emb: (V, E); w1: (E, H); b1: (H,); w2: (H, 1); b2: (1,)."""
    N = x_idx.shape[0]
    V, E = emb.shape
    H = w1.shape[1]

    # Lane-dense tile size: multiple of 128, capped by the (padded) batch.
    tn = _round_up(min(tile_n, _round_up(N, 128)), 128)
    N_pad = _round_up(N, tn)
    pad = N_pad - N

    # Indices as (1, N_pad) lane-dense int32 slabs (pad with a valid index 0).
    xi = jnp.pad(x_idx.astype(jnp.int32), (0, pad)).reshape(1, N_pad)
    yi = jnp.pad(y_idx.astype(jnp.int32), (0, pad)).reshape(1, N_pad)

    # Small resident weights, transposed so the batch dim stays on lanes.
    embT = emb.T.astype(jnp.float32)                 # (E, V)
    w1T = w1.T.astype(jnp.float32)                   # (H, E)
    b1c = b1.reshape(H, 1).astype(jnp.float32)       # (H, 1)
    w2c = w2.reshape(H, 1).astype(jnp.float32)       # (H, 1)
    b2s = b2.reshape(1, 1).astype(jnp.float32)       # (1, 1) scalar -> SMEM

    grid = (N_pad // tn,)

    out = pl.pallas_call(
        edge_kernel,
        out_shape=jax.ShapeDtypeStruct((1, N_pad), jnp.float32),
        grid_spec=pltpu.PrefetchScalarGridSpec(
            num_scalar_prefetch=0,
            grid=grid,
            in_specs=[
                pl.BlockSpec((1, tn), lambda i: (0, i)),      # x indices tile
                pl.BlockSpec((1, tn), lambda i: (0, i)),      # y indices tile
                pl.BlockSpec((E, V), lambda i: (0, 0)),       # emb^T (resident)
                pl.BlockSpec((H, E), lambda i: (0, 0)),       # W1^T (resident)
                pl.BlockSpec((H, 1), lambda i: (0, 0)),       # b1 column
                pl.BlockSpec((H, 1), lambda i: (0, 0)),       # w2 column
                pl.BlockSpec(memory_space=pltpu.MemorySpace.SMEM),  # b2 scalar
            ],
            out_specs=pl.BlockSpec((1, tn), lambda i: (0, i)),
        ),
        compiler_params=pltpu.CompilerParams(
            dimension_semantics=("parallel",)),
    )(xi, yi, embT, w1T, b1c, w2c, b2s)

    # Drop padding, return PyTorch-shaped (N, 1) output.
    return out[0, :N].reshape(N, 1)


def reference_forward(x_idx, y_idx, emb, w1, b1, w2, b2):
    ex = jnp.take(emb, x_idx, axis=0)
    ey = jnp.take(emb, y_idx, axis=0)
    h = jnp.maximum((ex * ey) @ w1 + b1, 0.0)
    return jax.nn.sigmoid(h @ w2 + b2)


if __name__ == "__main__":
    # Shapes consistent with the module: vocab_size=64, embedding_dim=32,
    # hidden=16, batch of N=1000 index pairs (tests padding + multi-step grid).
    vocab_size = 64
    embedding_dim = 32
    hidden = embedding_dim // 2
    N = 1000

    key = jax.random.PRNGKey(0)
    k_emb, k_w1, k_b1, k_w2, k_b2, k_x, k_y = jax.random.split(key, 7)

    emb = jax.random.normal(k_emb, (vocab_size, embedding_dim), jnp.float32)
    w1 = jax.random.normal(k_w1, (embedding_dim, hidden), jnp.float32) * 0.1
    b1 = jax.random.normal(k_b1, (hidden,), jnp.float32) * 0.1
    w2 = jax.random.normal(k_w2, (hidden, 1), jnp.float32) * 0.1
    b2 = jax.random.normal(k_b2, (1,), jnp.float32) * 0.1

    x_idx = jax.random.randint(k_x, (N,), 0, vocab_size, jnp.int32)
    y_idx = jax.random.randint(k_y, (N,), 0, vocab_size, jnp.int32)

    # tile_n=256 here just to exercise several grid steps at this small N;
    # for large batches keep the default (1024) or sweep 512-2048.
    out = edge_model_forward(x_idx, y_idx, emb, w1, b1, w2, b2, tile_n=256)
    out = jax.block_until_ready(out)

    ref = reference_forward(x_idx, y_idx, emb, w1, b1, w2, b2)
    assert out.shape == (N, 1)
    # approx=True reciprocal in the sigmoid -> allow ~1e-3-level deviation.
    assert jnp.allclose(out, ref, atol=2e-3, rtol=2e-3)

    print("KERNEL_OK")
</pallas_src>

<mosaic_0001>
module attributes {stable_mosaic.version = 11 : i64} {
  func.func @edge_kernel(%arg0: i32, %arg1: memref<1x256xi32, #tpu.memory_space<vmem>>, %arg2: memref<1x256xi32, #tpu.memory_space<vmem>>, %arg3: memref<32x64xf32, #tpu.memory_space<vmem>>, %arg4: memref<16x32xf32, #tpu.memory_space<vmem>>, %arg5: memref<16x1xf32, #tpu.memory_space<vmem>>, %arg6: memref<16x1xf32, #tpu.memory_space<vmem>>, %arg7: memref<1x1xf32, #tpu.memory_space<smem>>, %arg8: memref<1x256xf32, #tpu.memory_space<vmem>>) attributes {dimension_semantics = [#tpu.dimension_semantics<parallel>], iteration_bounds = array<i64: 4>, scalar_prefetch = 0 : i64, scratch_operands = 0 : i64, tpu.core_type = #tpu.core_type<tc>, window_params = [{transform_indices = @transform_0, window_bounds = array<i64: 1, 256>}, {transform_indices = @transform_1, window_bounds = array<i64: 1, 256>}, {pipeline_mode = #tpu.pipeline_mode<synchronous>, transform_indices = @transform_2, window_bounds = array<i64: 32, 64>}, {pipeline_mode = #tpu.pipeline_mode<synchronous>, transform_indices = @transform_3, window_bounds = array<i64: 16, 32>}, {pipeline_mode = #tpu.pipeline_mode<synchronous>, transform_indices = @transform_4, window_bounds = array<i64: 16, 1>}, {pipeline_mode = #tpu.pipeline_mode<synchronous>, transform_indices = @transform_5, window_bounds = array<i64: 16, 1>}, {transform_indices = @transform_6, window_bounds = array<i64: 1, 1>}, {transform_indices = @transform_7, window_bounds = array<i64: 1, 256>}]} {
    %0 = tpu.iota {dimensions = array<i32: 0>} : vector<64x256xi32>
    %c0 = arith.constant 0 : index
    %c0_0 = arith.constant 0 : index
    %1 = vector.load %arg1[%c0, %c0_0] : memref<1x256xi32, #tpu.memory_space<vmem>>, vector<1x256xi32>
    %2 = vector.broadcast %1 : vector<1x256xi32> to vector<64x256xi32>
    %3 = arith.cmpi eq, %0, %2 : vector<64x256xi32>
    %4 = arith.extui %3 : vector<64x256xi1> to vector<64x256xi32>
    %5 = arith.sitofp %4 : vector<64x256xi32> to vector<64x256xf32>
    %c0_1 = arith.constant 0 : index
    %c0_2 = arith.constant 0 : index
    %6 = vector.load %arg2[%c0_1, %c0_2] : memref<1x256xi32, #tpu.memory_space<vmem>>, vector<1x256xi32>
    %7 = vector.broadcast %6 : vector<1x256xi32> to vector<64x256xi32>
    %8 = arith.cmpi eq, %0, %7 : vector<64x256xi32>
    %9 = arith.extui %8 : vector<64x256xi1> to vector<64x256xi32>
    %10 = arith.sitofp %9 : vector<64x256xi32> to vector<64x256xf32>
    %c0_3 = arith.constant 0 : index
    %c0_4 = arith.constant 0 : index
    %11 = vector.load %arg3[%c0_3, %c0_4] : memref<32x64xf32, #tpu.memory_space<vmem>>, vector<32x64xf32>
    %cst = arith.constant dense<0.000000e+00> : vector<32x256xf32>
    %12 = tpu.matmul %11, %5, %cst {dimension_numbers = #tpu.dot_dimension_numbers<[1], [0], [0], [1], [0, 0, 1, 1], [], []>} : vector<32x64xf32>, vector<64x256xf32>, vector<32x256xf32> -> vector<32x256xf32>
    %c0_5 = arith.constant 0 : index
    %c0_6 = arith.constant 0 : index
    %13 = vector.load %arg3[%c0_5, %c0_6] : memref<32x64xf32, #tpu.memory_space<vmem>>, vector<32x64xf32>
    %cst_7 = arith.constant dense<0.000000e+00> : vector<32x256xf32>
    %14 = tpu.matmul %13, %10, %cst_7 {dimension_numbers = #tpu.dot_dimension_numbers<[1], [0], [0], [1], [0, 0, 1, 1], [], []>} : vector<32x64xf32>, vector<64x256xf32>, vector<32x256xf32> -> vector<32x256xf32>
    %c0_8 = arith.constant 0 : index
    %c0_9 = arith.constant 0 : index
    %15 = vector.load %arg4[%c0_8, %c0_9] : memref<16x32xf32, #tpu.memory_space<vmem>>, vector<16x32xf32>
    %16 = arith.mulf %12, %14 : vector<32x256xf32>
    %cst_10 = arith.constant dense<0.000000e+00> : vector<16x256xf32>
    %17 = tpu.matmul %15, %16, %cst_10 {dimension_numbers = #tpu.dot_dimension_numbers<[1], [0], [0], [1], [0, 0, 1, 1], [], []>} : vector<16x32xf32>, vector<32x256xf32>, vector<16x256xf32> -> vector<16x256xf32>
    %c0_11 = arith.constant 0 : index
    %c0_12 = arith.constant 0 : index
    %18 = vector.load %arg5[%c0_11, %c0_12] : memref<16x1xf32, #tpu.memory_space<vmem>>, vector<16x1xf32>
    %19 = vector.broadcast %18 : vector<16x1xf32> to vector<16x256xf32>
    %20 = arith.addf %17, %19 : vector<16x256xf32>
    %cst_13 = arith.constant 0.000000e+00 : f32
    %21 = vector.broadcast %cst_13 : f32 to vector<16x256xf32>
    %22 = arith.maximumf %20, %21 : vector<16x256xf32>
    %c0_14 = arith.constant 0 : index
    %c0_15 = arith.constant 0 : index
    %23 = vector.load %arg6[%c0_14, %c0_15] : memref<16x1xf32, #tpu.memory_space<vmem>>, vector<16x1xf32>
    %24 = vector.broadcast %23 : vector<16x1xf32> to vector<16x256xf32>
    %25 = arith.mulf %22, %24 : vector<16x256xf32>
    %cst_16 = arith.constant dense<0.000000e+00> : vector<256xf32>
    %26 = vector.multi_reduction <add>, %25, %cst_16 [0] : vector<16x256xf32> to vector<256xf32>
    %27 = vector.shape_cast %26 : vector<256xf32> to vector<1x256xf32>
    %c0_17 = arith.constant 0 : index
    %c0_18 = arith.constant 0 : index
    %28 = memref.load %arg7[%c0_17, %c0_18] : memref<1x1xf32, #tpu.memory_space<smem>>
    %29 = vector.broadcast %28 : f32 to vector<1x256xf32>
    %30 = arith.addf %27, %29 : vector<1x256xf32>
    %cst_19 = arith.constant 0.000000e+00 : f32
    %31 = vector.broadcast %cst_19 : f32 to vector<1x256xf32>
    %32 = arith.subf %31, %30 : vector<1x256xf32>
    %33 = math.exp %32 : vector<1x256xf32>
    %cst_20 = arith.constant 1.000000e+00 : f32
    %34 = vector.broadcast %cst_20 : f32 to vector<1x256xf32>
    %35 = arith.addf %34, %33 : vector<1x256xf32>
    %36 = tpu.reciprocal %35 {approx = true} : vector<1x256xf32> -> vector<1x256xf32>
    %c0_21 = arith.constant 0 : index
    %c0_22 = arith.constant 0 : index
    %37 = vector.load %arg8[%c0_21, %c0_22] : memref<1x256xf32, #tpu.memory_space<vmem>>, vector<1x256xf32>
    tpu.vector_store %arg8[%c0_21, %c0_22], %36 {strides = array<i32>} : memref<1x256xf32, #tpu.memory_space<vmem>>, vector<1x256xf32>,
    return
  }
  func.func @transform_0(%arg0: i32) -> (i32, i32) {
    %c0_i32 = arith.constant 0 : i32
    %c0_i32_0 = arith.constant 0 : i32
    return %c0_i32, %arg0 : i32, i32
  }
  func.func @transform_1(%arg0: i32) -> (i32, i32) {
    %c0_i32 = arith.constant 0 : i32
    %c0_i32_0 = arith.constant 0 : i32
    return %c0_i32, %arg0 : i32, i32
  }
  func.func @transform_2(%arg0: i32) -> (i32, i32) {
    %c0_i32 = arith.constant 0 : i32
    %c0_i32_0 = arith.constant 0 : i32
    %c0_i32_1 = arith.constant 0 : i32
    return %c0_i32, %c0_i32_0 : i32, i32
  }
  func.func @transform_3(%arg0: i32) -> (i32, i32) {
    %c0_i32 = arith.constant 0 : i32
    %c0_i32_0 = arith.constant 0 : i32
    %c0_i32_1 = arith.constant 0 : i32
    return %c0_i32, %c0_i32_0 : i32, i32
  }
  func.func @transform_4(%arg0: i32) -> (i32, i32) {
    %c0_i32 = arith.constant 0 : i32
    %c0_i32_0 = arith.constant 0 : i32
    %c0_i32_1 = arith.constant 0 : i32
    return %c0_i32, %c0_i32_0 : i32, i32
  }
  func.func @transform_5(%arg0: i32) -> (i32, i32) {
    %c0_i32 = arith.constant 0 : i32
    %c0_i32_0 = arith.constant 0 : i32
    %c0_i32_1 = arith.constant 0 : i32
    return %c0_i32, %c0_i32_0 : i32, i32
  }
  func.func @transform_6(%arg0: i32) -> (i32, i32) {
    %c0_i32 = arith.constant 0 : i32
    %c0_i32_0 = arith.constant 0 : i32
    %c0_i32_1 = arith.constant 0 : i32
    return %c0_i32, %c0_i32_0 : i32, i32
  }
  func.func @transform_7(%arg0: i32) -> (i32, i32) {
    %c0_i32 = arith.constant 0 : i32
    %c0_i32_0 = arith.constant 0 : i32
    return %c0_i32, %arg0 : i32, i32
  }
}

</mosaic_0001>

<bundles_post_ra>
// kernel: tpu_custom_call.1
= control target key start
LH: loop header
LB: loop body
LE: loop exit
PB: predicated region body
PF: predicated region fallthrough
CT: control target
= control target key end

     0   :  { %s1644_s0 = inlined_call_operand.hbm [shape: s32[1,1024], index: 0, kind: input, shape index: {}]   ;;  %s1645_s1 = inlined_call_operand.hbm [shape: s32[1,1024], index: 1, kind: input, shape index: {}]   ;;  %s1646_s2 = inlined_call_operand.vmem [shape: f32[32,64], index: 2, kind: input, shape index: {}]   ;;  %s1647_s3 = inlined_call_operand.vmem [shape: f32[16,32], index: 3, kind: input, shape index: {}]   ;;  %s1648_s4 = inlined_call_operand.vmem [shape: f32[16,1], index: 4, kind: input, shape index: {}]   ;;  %s1649_s5 = inlined_call_operand.vmem [shape: f32[16,1], index: 5, kind: input, shape index: {}]   ;;  %s1650_s6 = inlined_call_operand.<no memory space> [shape: f32[1,1], index: 6, kind: input, shape index: {}]   ;;  %s1651_s7 = inlined_call_operand.hbm [shape: f32[1,1024], index: 7, kind: output, shape index: {}]  }
   0x1   :  { %12 = sst [smem:[#allocation2]] %s1650_s6 }
   0x2   :  { %13 = vsyncpa [#allocation4], 0 }
   0x3   :  { %15 = vsyncpa [#allocation4 + $0x1], 0 }
   0x4   :  { %16 = vsyncpa [#allocation7], 0 }
   0x5   :  { %18 = vsyncpa [#allocation7 + $0x1], 0 }
   0x6   :  { %19 = vsyncpa [#allocation5], 0 }
   0x7   :  { %21 = vsyncpa [#allocation5 + $0x1], 0  ;;  %s1326_s26 = smov 0   ;;  %s1328_s27 = smov 0  }
   0x8   :  { %s1330_s28 = smov 0   ;;  %s1332_s29 = smov 0  }
   0x9 LB: > { %s1347_s6 = sadd.s32 4294967295, %s1274_s29   ;;  %s940_s30 = sadd.s32 4294967294, %s1274_s29   ;;  %s1274_s29 = sphi %s1332_s29, %s1669_s29   ;;  %s1270_s28 = sphi %s1330_s28, %s1668_s28   ;;  %s1266_s27 = sphi %s1328_s27, %s1667_s27   ;;  %s1262_s26 = sphi %s1326_s26, %s1666_s26  }
   0xa   : > { %s1351_s8 = sadd.s32 1, %s1274_s29   ;;  %s34_s9 = sadd.s32 1, %s1270_s28 }
   0xb   : > { %s31_s10 = ssub.s32 %s1274_s29, %s1351_s8  ;;  %p41_p0 = scmp.ne.s32.totalorder %s1270_s28, %s1266_s27 }
   0xc   : > { %p32_p1 = scmp.eq.s32.totalorder %s31_s10, 0  ;;  %p42_p2 = scmp.eq.s32.totalorder %s1274_s29, 0 }
   0xd   : > { %p47_p3 = scmp.ne.s32.totalorder %s1266_s27, %s1262_s26  ;;  %p48_p4 = scmp.eq.s32.totalorder %s1347_s6, 0 }
   0xe   : > { %s1363_s11 = scalar_select %p32_p1, %s1270_s28, %s34_s9  }
   0xf   : > { %p1365_p5 = por %p42_p2, %p41_p0  ;;  %p1369_p6 = por %p48_p4, %p47_p3 }
  0x10   : > { %p202_p7 = scmp.eq.s32.totalorder %s1347_s6, 3  ;;  %p208_p8 = scmp.eq.s32.totalorder %s940_s30, 3 }
  0x11   : > { %s1655_s13 = scalar_select %p1369_p6, 1, 0 }
  0x12   : > { %p1096_p9 = scmp.lt.s32.totalorder %s1274_s29, 4  ;;  %p1375_p10 = por %p202_p7, %p41_p0 }
  0x13   : > { %p1379_p11 = por %p208_p8, %p47_p3  ;;  %s1384_s16 = sand.u32 1, %s1270_s28  }
  0x14   : > { %s1656_s14 = scalar_select %p1375_p10, 1, 0 }
  0x15   : > { %s1657_s15 = scalar_select %p1379_p11, 1, 0 }
  0x16   : > { %s1032_s17 = sshll.u32 %s1274_s29, 5  ;;  %s943_s18 = sshll.u32 %s1384_s16, 1 }
  0x17   : > { %s1393_s21 = scalar_lea.hbm %s1644_s0, %s1032_s17  ;;  %s247_s22 = scalar_lea.vmem [#allocation3], %s943_s18 }
  0x18   : > { %s255_s23 = sshll.u32 %s247_s22, 4  ;;  %p1399_p12 = pnand %p1096_p9, %p1365_p5  ;;  %s1403_s23 = int_to_ptr.vmem [resolvable:$true] %s255_s23 }
  0x19   : > { %s244_s25 = scalar_lea.sflag [#allocation4], %s1384_s16  ;;  %s1144_s30 = scalar_lea.hbm %s1393_s21, 32 }
  0x1a   : > { %p1145_p1 = scmp.ne.s32.totalorder %s1393_s21, %s1144_s30  ;;  %p1146_p2 = pneg %p1399_p12 }
  0x1b   : > { %s1149_s12 = scalar_lea.hbm %s1644_s0, 128  ;;  %p1150_p5 = scmp.lt.u32.totalorder %s1393_s21, %s1644_s0 }
  0x1c   : > { %p1147_p3 = pnand %p1146_p2, %p1145_p1  ;;  %p1151_p7 = scmp.lt.u32.totalorder %s1149_s12, %s1144_s30 }
  0x1d   : > { %p1153_p9 = scmp.lt.u32.totalorder %s1144_s30, %s1393_s21 }
  0x1e   : > { %p1148_p4 = pneg %p1147_p3  ;;  %p1152_p8 = por %p1151_p7, %p1150_p5 }
  0x20   : > { %p1154_p13 = por %p1153_p9, %p1152_p8 }
  0x22   : > { %p1155_p0 = pnand %p1154_p13, %p1148_p4 }
  0x24   : > { %1158 = shalt.err (!%p1155_p0)
}
  0x25   : > { %s1159_s22 = scalar_lea.vmem %s1403_s23, 32  ;;  %s1276_s9 = smov [#allocation3]  }
  0x26   : > { %p1160_p1 = scmp.ne.s32.totalorder %s1403_s23, %s1159_s22  ;;  %s1164_s10 = sshll.u32 %s1276_s9, 4  ;;  %s1165_s10 = int_to_ptr.vmem [resolvable:$false] %s1164_s10 }
  0x27   : > { %s1166_s19 = scalar_lea.vmem %s1165_s10, 64  ;;  %p1167_p10 = scmp.lt.s32.totalorder %s1403_s23, %s1165_s10 }
  0x28   : > { %p1162_p3 = pnand %p1160_p1, %p1146_p2  ;;  %p1168_p5 = scmp.lt.s32.totalorder %s1166_s19, %s1159_s22 }
  0x2a   : > { %p1163_p11 = pneg %p1162_p3  ;;  %p1169_p7 = por %p1168_p5, %p1167_p10 }
  0x2c   : > { %p1170_p8 = pnand %p1169_p7, %p1163_p11 }
  0x2e   : > { %1173 = shalt.err (!%p1170_p8)
}
  0x2f   : > { %1088 = dma.hbm_to_vmem [thread:$0]  (!%p1399_p12), %s1393_s21, 32, %s1403_s23, %s244_s25  }
  0x30   : > { %p1659_p13 = scmp.lt.s32.totalorder %s1274_s29, 5  ;;  %p1660_p0 = scmp.ge.s32.totalorder %s1274_s29, 1 }
  0x31   : > { %s1446_s22 = scalar_lea.hbm %s1645_s1, %s1032_s17  ;;  %s266_s9 = scalar_lea.vmem [#allocation6], %s943_s18 }
  0x32   : > { %p1437_p4 = pnand %p1660_p0, %p1659_p13  ;;  %s274_s10 = sshll.u32 %s266_s9, 4  ;;  %s275_s10 = int_to_ptr.vmem [resolvable:$true] %s274_s10 }
  0x33   : > { %s263_s21 = scalar_lea.sflag [#allocation7], %s1384_s16  ;;  %s1174_s23 = scalar_lea.hbm %s1446_s22, 32 }
  0x34   : > { %s1661_s30 = scalar_select %p1437_p4, 1, 0 }
  0x35   : > { %p1175_p10 = scmp.ne.s32.totalorder %s1446_s22, %s1174_s23  ;;  %s1179_s17 = scalar_lea.hbm %s1645_s1, 128 }
  0x36   : > { %p1180_p1 = scmp.lt.u32.totalorder %s1446_s22, %s1645_s1  ;;  %p1181_p3 = scmp.lt.u32.totalorder %s1179_s17, %s1174_s23 }
  0x37   : > { %p1177_p11 = pnand %p1175_p10, %p1146_p2  ;;  %p1183_p7 = scmp.lt.u32.totalorder %s1174_s23, %s1446_s22 }
  0x38   : > { %p1182_p5 = por %p1181_p3, %p1180_p1 }
  0x39   : > { %p1178_p9 = pneg %p1177_p11 }
  0x3a   : > { %p1184_p8 = por %p1183_p7, %p1182_p5 }
  0x3c   : > { %p1185_p13 = pnand %p1184_p8, %p1178_p9 }
  0x3e   : > { %1188 = shalt.err (!%p1185_p13)
}
  0x3f   : > { %s1189_s16 = scalar_lea.vmem %s275_s10, 32  ;;  %s1277_s18 = smov [#allocation6]  }
  0x40   : > { %p1190_p0 = scmp.ne.s32.totalorder %s275_s10, %s1189_s16  ;;  %s1194_s9 = sshll.u32 %s1277_s18, 4  ;;  %s1195_s9 = int_to_ptr.vmem [resolvable:$false] %s1194_s9 }
  0x41   : > { %s1196_s25 = scalar_lea.vmem %s1195_s9, 64  ;;  %p1197_p6 = scmp.lt.s32.totalorder %s275_s10, %s1195_s9 }
  0x42   : > { %p1192_p10 = pnand %p1190_p0, %p1146_p2  ;;  %p1198_p4 = scmp.lt.s32.totalorder %s1196_s25, %s1189_s16 }
  0x44   : > { %p1193_p11 = pneg %p1192_p10  ;;  %p1199_p1 = por %p1198_p4, %p1197_p6 }
  0x46   : > { %p1200_p3 = pnand %p1199_p1, %p1193_p11 }
  0x48   : > { %1203 = shalt.err (!%p1200_p3)
}
  0x49   : > { %1091 = dma.hbm_to_vmem [thread:$0]  (!%p1399_p12), %s1446_s22, 32, %s275_s10, %s263_s21  }
  0x4a   : > { %p1662_p9 = scmp.ne.s32.totalorder %s1661_s30, 0 }
  0x4b   : > { %s1473_s23 = sand.u32 (!%p1662_p9), 1, %s1266_s27   ;;  %p1663_p6 = scmp.ne.s32.totalorder (!%p1662_p9), %s1655_s13, 0 }
  0x4c   : > { %283 = sbr.rel (%p1662_p9) target bundleno = 630 (0x276), region = 48  ;;  %s1476_s19 = sshll.u32 (!%p1662_p9), %s1473_s23, 1 }
  0x4d   : > { %s286_s17 = scalar_lea.sflag (!%p1662_p9), [#allocation4], %s1473_s23  ;;  %s289_s12 = scalar_lea.vmem (!%p1662_p9), [#allocation3], %s1476_s19 }
  0x53   : > { %1249 = dma.done.wait (%p1663_p6), %s286_s17, 32  }
  0x54   : > { %1251 = vsyncadd (%p1663_p6), %s286_s17, 4294967264  ;;  %s295_s24 = scalar_lea.sflag [#allocation7], %s1473_s23  ;;  %s298_s30 = scalar_lea.vmem [#allocation6], %s1476_s19 }
  0x55   : > { %1253 = dma.done.wait (%p1663_p6), %s295_s24, 32  }
  0x56   : > { %1255 = vsyncadd (%p1663_p6), %s295_s24, 4294967264  ;;  %v337_v0 = vlaneseq  ;;  %v1278_v1 = vmov 0.0   ;;  %v346_v6 = vld [vmem:[%s289_s12] sm:$0x3]  ;;  %v403_v7 = vld [vmem:[%s298_s30] sm:$0x3] }
  0x57   : > { %541 = vmatprep.mubr.f32.mxu0 %v1278_v1  ;;  %630 = vmatprep.mubr.f32.mxu1 %v1278_v1  ;;  %v1279_v14 = vmov 1.0|1.0   ;;  %v460_v19 = vld [vmem:[%s1646_s2] sm:$0xff]  ;;  %v461_v20 = vld [vmem:[%s1646_s2 + $0x8] sm:$0xff]  ;;  %v462_v21 = vld [vmem:[%s1646_s2 + $0x10] sm:$0xff]  ;;  %v1280_v25 = vmov 0  }
  0x58   : > { %v1493_v2 = vshrl.u32 %v337_v0, 7  ;;  %v463_v22 = vld [vmem:[%s1646_s2 + $0x18] sm:$0xff]  ;;  %v665_v23 = vld [vmem:[%s1648_s4] sm:$0xff]  ;;  %1134 = vset.pattern.permute.xlu0 %v1280_v25  ;;  %1135 = vset.pattern.permute.xlu1 %v1280_v25  ;;  %v666_v26 = vld [vmem:[%s1648_s4 + $0x8] sm:$0xff]  ;;  %s795_s9 = sld [smem:[#allocation2]]  ;;  %s1034_s25 = sshll.u32 %s1347_s6, 5 }
  0x59   : > { %v765_v24 = vld [vmem:[%s1649_s5] sm:$0xff]  ;;  %669 = vperm.xlu0 %1134, %v665_v23   ;;  %v766_v27 = vld [vmem:[%s1649_s5 + $0x8] sm:$0xff]  ;;  %s333_s17 = scalar_lea.vmem [#allocation8], %s1476_s19  ;;  %s1601_s13 = scalar_lea.hbm %s1651_s7, %s1034_s25 }
  0x5a   : > { %v353_v3 = vsub.s32 1, %v1493_v2  ;;  %v349_v4 = vsub.s32 0, %v1493_v2  ;;  %v339_v5 = vadd.s32 8, %v1493_v2  ;;  %v340_v8 = vadd.s32 16, %v1493_v2  ;;  %769 = vperm.xlu1 %1135, %v765_v24   ;;  %v655_v56 = vld [vmem:[%s1647_s3] sm:$0xff]  ;;  %v656_v57 = vld [vmem:[%s1647_s3 + $0x8] sm:$0xff] }
  0x5b   : > { %v341_v9 = vadd.s32 24, %v1493_v2  ;;  %v342_v15 = vadd.s32 32, %v1493_v2  ;;  %v343_v16 = vadd.s32 40, %v1493_v2  ;;  %v344_v17 = vadd.s32 48, %v1493_v2  ;;  %s847_s12 = sshll.u32 %s333_s17, 4  ;;  %s833_s22 = scalar_lea.sflag [#allocation5], %s1473_s23  ;;  %s1603_s12 = int_to_ptr.vmem [resolvable:$true] %s847_s12 }
  0x5c   : > { %v1500_v10 = vrot.slane %v346_v6, %v353_v3  ;;  %v1502_v11 = vrot.slane %v403_v7, %v353_v3  ;;  %v1504_v12 = vrot.slane %v346_v6, %v349_v4  ;;  %v1506_v13 = vrot.slane %v403_v7, %v349_v4  ;;  %s1204_s10 = scalar_lea.vmem %s1603_s12, 32  ;;  %p1664_p2 = scmp.ne.s32.totalorder %s1656_s14, 0 }
  0x5d   : > { %v345_v18 = vadd.s32 56, %v1493_v2  ;;  %674 = vperm.xlu0 %1134, %v666_v26   ;;  %p1205_p12 = scmp.ne.s32.totalorder %s1603_s12, %s1204_s10  ;;  %s1282_s6 = smov [#allocation8]  }
  0x5e   : > { %vm356_vm0 = vcmp.eq.s32.totalorder %v1493_v2, %v1500_v10  ;;  %vm358_vm1 = vcmp.eq.s32.totalorder %v339_v5, %v1500_v10  ;;  %vm413_vm2 = vcmp.eq.s32.totalorder %v1493_v2, %v1502_v11  ;;  %vm415_vm3 = vcmp.eq.s32.totalorder %v339_v5, %v1502_v11  ;;  %774 = vperm.xlu1 %1135, %v766_v27   ;;  %s1208_s19 = sshll.u32 %s1282_s6, 4  ;;  %s1209_s19 = int_to_ptr.vmem [resolvable:$false] %s1208_s19 }
  0x5f   : > { %vm1035_vm4 = vmpackc.low %vm358_vm1, %vm356_vm0  ;;  %vm355_vm5 = vcmp.eq.s32.totalorder %v1493_v2, %v1504_v12  ;;  %vm357_vm6 = vcmp.eq.s32.totalorder %v339_v5, %v1504_v12  ;;  %vm412_vm7 = vcmp.eq.s32.totalorder %v1493_v2, %v1506_v13  ;;  %vm414_vm8 = vcmp.eq.s32.totalorder %v339_v5, %v1506_v13  ;;  %p1206_p4 = pnand %p1205_p12, %p1664_p2  ;;  %s1210_s21 = scalar_lea.vmem %s1209_s19, 64 }
  0x60   : > { %1036 = vmatprep.subr.msk.bf16.mxu0 %vm1035_vm4, %v1279_v14  ;;  %vm1051_vm9 = vmpackc.low %vm415_vm3, %vm413_vm2  ;;  %vm360_vm10 = vcmp.eq.s32.totalorder %v340_v8, %v1500_v10  ;;  %vm362_vm11 = vcmp.eq.s32.totalorder %v341_v9, %v1500_v10  ;;  %vm417_vm13 = vcmp.eq.s32.totalorder %v340_v8, %v1502_v11  ;;  %vm419_vm14 = vcmp.eq.s32.totalorder %v341_v9, %v1502_v11  ;;  %p1211_p7 = scmp.lt.s32.totalorder %s1603_s12, %s1209_s19  ;;  %p1212_p8 = scmp.lt.s32.totalorder %s1210_s21, %s1204_s10 }
  0x61   : > { %1052 = vmatprep.subr.msk.bf16.mxu1 %vm1051_vm9, %v1279_v14  ;;  %vm1037_vm12 = vmpackc.low %vm357_vm6, %vm355_vm5  ;;  %vm359_vm0 = vcmp.eq.s32.totalorder %v340_v8, %v1504_v12  ;;  %vm361_vm1 = vcmp.eq.s32.totalorder %v341_v9, %v1504_v12  ;;  %vm416_vm3 = vcmp.eq.s32.totalorder %v340_v8, %v1506_v13  ;;  %vm418_vm4 = vcmp.eq.s32.totalorder %v341_v9, %v1506_v13  ;;  %p1207_p5 = pneg %p1206_p4 }
  0x62   : > { %1038 = vmatpush1.bf16.msk.msra.mxu0 %vm1037_vm12, %v1279_v14  ;;  %vm1053_vm15 = vmpackc.low %vm414_vm8, %vm412_vm7  ;;  %vm364_vm5 = vcmp.eq.s32.totalorder %v342_v15, %v1500_v10  ;;  %vm366_vm6 = vcmp.eq.s32.totalorder %v343_v16, %v1500_v10  ;;  %vm421_vm8 = vcmp.eq.s32.totalorder %v342_v15, %v1502_v11  ;;  %vm363_vm12 = vcmp.eq.s32.totalorder %v342_v15, %v1504_v12  ;;  %p1213_p13 = por %p1212_p8, %p1211_p7 }
  0x63   : > { %1054 = vmatpush1.bf16.msk.msra.mxu1 %vm1053_vm15, %v1279_v14  ;;  %vm1039_vm2 = vmpackc.low %vm362_vm11, %vm360_vm10  ;;  %vm423_vm10 = vcmp.eq.s32.totalorder %v343_v16, %v1502_v11  ;;  %vm420_vm15 = vcmp.eq.s32.totalorder %v342_v15, %v1506_v13  ;;  %v796_v27 = vstv %s795_s9 }
  0x64   : > { %1040 = vmatprep.subr.msk.bf16.mxu0 %vm1039_vm2, %v1279_v14  ;;  %vm1055_vm9 = vmpackc.low %vm419_vm14, %vm417_vm13  ;;  %vm365_vm13 = vcmp.eq.s32.totalorder %v343_v16, %v1504_v12  ;;  %vm422_vm2 = vcmp.eq.s32.totalorder %v343_v16, %v1506_v13  ;;  %p1214_p0 = pnand %p1213_p13, %p1207_p5 }
  0x65   : > { %1056 = vmatprep.subr.msk.bf16.mxu1 %vm1055_vm9, %v1279_v14  ;;  %vm1041_vm7 = vmpackc.low %vm361_vm1, %vm359_vm0  ;;  %vm368_vm0 = vcmp.eq.s32.totalorder %v344_v17, %v1500_v10  ;;  %vm370_vm1 = vcmp.eq.s32.totalorder %v345_v18, %v1500_v10 }
  0x66   : > { %1042 = vmatpush1.bf16.msk.msra.mxu0 %vm1041_vm7, %v1279_v14  ;;  %vm1057_vm11 = vmpackc.low %vm418_vm4, %vm416_vm3  ;;  %vm425_vm3 = vcmp.eq.s32.totalorder %v344_v17, %v1502_v11  ;;  %vm427_vm4 = vcmp.eq.s32.totalorder %v345_v18, %v1502_v11 }
  0x67   : > { %1058 = vmatpush1.bf16.msk.msra.mxu1 %vm1057_vm11, %v1279_v14  ;;  %vm1043_vm14 = vmpackc.low %vm366_vm6, %vm364_vm5  ;;  %vm367_vm5 = vcmp.eq.s32.totalorder %v344_v17, %v1504_v12  ;;  %vm369_vm6 = vcmp.eq.s32.totalorder %v345_v18, %v1504_v12 }
  0x68   : > { %1044 = vmatprep.subr.msk.bf16.mxu0 %vm1043_vm14, %v1279_v14  ;;  %vm1059_vm9 = vmpackc.low %vm423_vm10, %vm421_vm8  ;;  %vm424_vm8 = vcmp.eq.s32.totalorder %v344_v17, %v1506_v13  ;;  %vm426_vm10 = vcmp.eq.s32.totalorder %v345_v18, %v1506_v13 }
  0x69   : > { %1060 = vmatprep.subr.msk.bf16.mxu1 %vm1059_vm9, %v1279_v14  ;;  %vm1045_vm7 = vmpackc.low %vm365_vm13, %vm363_vm12 }
  0x6a   : > { %1046 = vmatpush1.bf16.msk.msra.mxu0 %vm1045_vm7, %v1279_v14  ;;  %vm1061_vm11 = vmpackc.low %vm422_vm2, %vm420_vm15  ;;  %vm464_vm15 = vcmask 523264   ;;  %vm677_vm2 = vcmask 261120  }
  0x6b   : > { %1062 = vmatpush1.bf16.msk.msra.mxu1 %vm1061_vm11, %v1279_v14  ;;  %vm1047_vm14 = vmpackc.low %vm370_vm1, %vm368_vm0  ;;  %vm829_vm0 = vcmp.lt.s32.totalorder %v337_v0, 256 }
  0x6c   : > { %1048 = vmatprep.subr.msk.bf16.mxu0 %vm1047_vm14, %v1279_v14  ;;  %vm1063_vm9 = vmpackc.low %vm427_vm4, %vm425_vm3 }
  0x6d   : > { %1064 = vmatprep.subr.msk.bf16.mxu1 %vm1063_vm9, %v1279_v14  ;;  %vm1049_vm12 = vmpackc.low %vm369_vm6, %vm367_vm5 }
  0x6e   : > { %1050 = vmatpush1.bf16.msk.msra.mxu0 %vm1049_vm12, %v1279_v14  ;;  %vm1065_vm13 = vmpackc.low %vm426_vm10, %vm424_vm8 }
  0x6f   : > { %1066 = vmatpush1.bf16.msk.msra.mxu1 %vm1065_vm13, %v1279_v14 }
  0x71   : > { %1001 = vmatmul.mubr.msk.f32.vlgmr.msra.gmra.mrb[0].mxu0 %vm464_vm15, %v460_v19 }
  0x72   : > { %1021 = vmatmul.mubr.msk.f32.vlgmr.msra.gmra.mrb[0].mxu1 %vm464_vm15, %v460_v19  ;;  %547 = vmatprep.mubr.f32.mxu0 %v1278_v1 }
  0x73   : > { %636 = vmatprep.mubr.f32.mxu1 %v1278_v1 }
  0x75   : > { %1002 = vmatmul.mubr.msk.f32.gmra.mrb[2].mxu0 %vm464_vm15, %v461_v20 }
  0x76   : > { %1022 = vmatmul.mubr.msk.f32.gmra.mrb[2].mxu1 %vm464_vm15, %v461_v20  ;;  %553 = vmatprep.mubr.f32.mxu0 %v1278_v1 }
  0x77   : > { %642 = vmatprep.mubr.f32.mxu1 %v1278_v1 }
  0x79   : > { %1003 = vmatmul.mubr.msk.f32.gmra.mrb[4].mxu0 %vm464_vm15, %v462_v21 }
  0x7a   : > { %1023 = vmatmul.mubr.msk.f32.gmra.mrb[4].mxu1 %vm464_vm15, %v462_v21  ;;  %559 = vmatprep.mubr.f32.mxu0 %v1278_v1 }
  0x7b   : > { %648 = vmatprep.mubr.f32.mxu1 %v1278_v1 }
  0x7d   : > { %1004 = vmatmul.mubr.msk.f32.gmra.mrb[6].mxu0 %vm464_vm15, %v463_v22 }
  0x7e   : > { %1024 = vmatmul.mubr.msk.f32.gmra.mrb[6].mxu1 %vm464_vm15, %v463_v22  ;;  %748 = vmatprep.mubr.f32.mxu0 %v1278_v1 }
  0x7f   : > { %754 = vmatprep.mubr.f32.mxu1 %v1278_v1 }
  0xd8   : > { %v670_v58 = vpop.permute.xlu0 %669 }
  0xd9   : > { %v770_v59 = vpop.permute.xlu1 %769 }
  0xdc   : > { %v675_v60 = vpop.permute.xlu0 %674 }
  0xdd   : > { %v775_v11 = vpop.permute.xlu1 %774 }
 0x144   : > { %v543_v28 = vpop.f32.mrb[0].mxu0 }
 0x145   : > { %v632_v29 = vpop.f32.mrb[0].mxu1  ;;  %v545_v30 = vpop.f32.mrb[1].mxu0 }
 0x146   : > { %v657_v31 = vmul.f32 %v632_v29, %v543_v28  ;;  %v634_v32 = vpop.f32.mrb[1].mxu1 }
 0x147   : > { %v658_v33 = vmul.f32 %v634_v32, %v545_v30 }
 0x148   : > { %v549_v34 = vpop.f32.mrb[2].mxu0 }
 0x149   : > { %v638_v35 = vpop.f32.mrb[2].mxu1  ;;  %v551_v36 = vpop.f32.mrb[3].mxu0 }
 0x14a   : > { %v659_v37 = vmul.f32 %v638_v35, %v549_v34  ;;  %v640_v38 = vpop.f32.mrb[3].mxu1 }
 0x14b   : > { %v660_v39 = vmul.f32 %v640_v38, %v551_v36 }
 0x14c   : > { %v1069_v40 = vpack.c.bf16 %v659_v37, %v657_v31  ;;  %v555_v41 = vpop.f32.mrb[4].mxu0 }
 0x14d   : > { %v1067_v42 = vpack.c.bf16 %v660_v39, %v658_v33  ;;  %v644_v43 = vpop.f32.mrb[4].mxu1  ;;  %v557_v44 = vpop.f32.mrb[5].mxu0 }
 0x14e   : > { %v661_v45 = vmul.f32 %v644_v43, %v555_v41  ;;  %v646_v46 = vpop.f32.mrb[5].mxu1  ;;  %v1281_v41 = vmov 1966171168  }
 0x14f   : > { %v662_v47 = vmul.f32 %v646_v46, %v557_v44  ;;  %1068 = vmatprep.subr.bf16.mxu0 %v1067_v42  ;;  %1075 = vmatprep.subr.bf16.mxu1 %v1067_v42  ;;  %v813_v42 = vunpack.c.l.s4 %v1281_v41 }
 0x150   : > { %1070 = vmatpush1.bf16.msra.mxu0 %v1069_v40  ;;  %1077 = vmatpush1.bf16.msra.mxu1 %v1069_v40  ;;  %v561_v48 = vpop.f32.mrb[6].mxu0 }
 0x151   : > { %v650_v49 = vpop.f32.mrb[6].mxu1  ;;  %v563_v50 = vpop.f32.mrb[7].mxu0  ;;  %v814_v43 = vunpack.c.0.s8 %v813_v42 }
 0x152   : > { %v663_v51 = vmul.f32 %v650_v49, %v561_v48  ;;  %v652_v52 = vpop.f32.mrb[7].mxu1 }
 0x153   : > { %v664_v53 = vmul.f32 %v652_v52, %v563_v50 }
 0x154   : > { %v1073_v54 = vpack.c.bf16 %v663_v51, %v661_v45  ;;  %v817_v45 = vsub.s32 %v814_v43, %v1493_v2 }
 0x155   : > { %v1071_v55 = vpack.c.bf16 %v664_v53, %v662_v47 }
 0x157   : > { %1072 = vmatprep.subr.bf16.mxu0 %v1071_v55  ;;  %1076 = vmatprep.subr.bf16.mxu1 %v1071_v55 }
 0x158   : > { %1074 = vmatpush1.bf16.msra.mxu0 %v1073_v54  ;;  %1078 = vmatpush1.bf16.msra.mxu1 %v1073_v54 }
 0x15b   : > { %1025 = vmatmul.mubr.msk.f32.vlgmr.msra.gmra.mrb[8].mxu0 %vm677_vm2, %v655_v56  ;;  %1026 = vmatmul.mubr.msk.f32.vlgmr.msra.gmra.mrb[8].mxu1 %vm677_vm2, %v656_v57 }
 0x22e   : > { %v750_v61 = vpop.f32.mrb[8].mxu0  ;;  %v756_v62 = vpop.f32.mrb[8].mxu1 }
 0x22f   : > { %v751_v63 = vadd.f32 %v750_v61, %v670_v58  ;;  %v757_v1 = vadd.f32 %v756_v62, %v675_v60  ;;  %v752_v3 = vpop.f32.mrb[9].mxu0  ;;  %v758_v4 = vpop.f32.mrb[9].mxu1 }
 0x230   : > { %v753_v5 = vadd.f32 %v752_v3, %v670_v58  ;;  %v759_v6 = vadd.f32 %v758_v4, %v675_v60 }
 0x231   : > { %v761_v7 = vmax.f32 %v751_v63, 0.0  ;;  %v763_v8 = vmax.f32 %v757_v1, 0.0 }
 0x232   : > { %v762_v9 = vmax.f32 %v753_v5, 0.0  ;;  %v764_v10 = vmax.f32 %v759_v6, 0.0 }
 0x233   : > { %v777_v12 = vmul.f32 %v770_v59, %v761_v7  ;;  %v779_v13 = vmul.f32 %v775_v11, %v763_v8 }
 0x234   : > { %v778_v14 = vmul.f32 %v770_v59, %v762_v9  ;;  %v780_v15 = vmul.f32 %v775_v11, %v764_v10 }
 0x235   : > { %v781_v16 = vadd.f32 %v779_v13, %v777_v12 }
 0x236   : > { %v788_v17 = vadd.f32 %v780_v15, %v778_v14 }
 0x237   : > { %v782_v18 = vrot.slane %v781_v16, 4 }
 0x238   : > { %v789_v19 = vrot.slane %v788_v17, 4 }
 0x239   : > { %v783_v20 = vadd.f32 %v782_v18, %v781_v16 }
 0x23a   : > { %v790_v21 = vadd.f32 %v789_v19, %v788_v17 }
 0x23b   : > { %v784_v22 = vrot.slane %v783_v20, 2 }
 0x23c   : > { %v791_v23 = vrot.slane %v790_v21, 2 }
 0x23d   : > { %v785_v24 = vadd.f32 %v784_v22, %v783_v20 }
 0x23e   : > { %v792_v25 = vadd.f32 %v791_v23, %v790_v21 }
 0x23f   : > { %v786_v26 = vrot.slane %v785_v24, 1 }
 0x240   : > { %v793_v28 = vrot.slane %v792_v25, 1 }
 0x241   : > { %v787_v29 = vadd.f32 %v786_v26, %v785_v24 }
 0x242   : > { %v794_v30 = vadd.f32 %v793_v28, %v792_v25 }
 0x243   : > { %v797_v31 = vadd.f32 %v796_v27, %v787_v29 }
 0x244   : > { %v798_v32 = vadd.f32 %v796_v27, %v794_v30 }
 0x245   : > { %v799_v33 = vsub.f32 0.0, %v797_v31 }
 0x246   : > { %v800_v34 = vsub.f32 0.0, %v798_v32 }
 0x247   : > { %v801_v35 = vmul.f32 1.442695, %v799_v33 }
 0x248   : > { %v803_v36 = vmul.f32 1.442695, %v800_v34 }
 0x249   : > { %1136 = vpow2.f32 %v801_v35 }
 0x24a   : > { %1138 = vpow2.f32 %v803_v36 }
 0x253   : > { %v1137_v37 = vpop.eup %1136 }
 0x254   : > { %v1139_v38 = vpop.eup %1138  ;;  %v805_v39 = vadd.f32 1.0, %v1137_v37 }
 0x255   : > { %v806_v40 = vadd.f32 1.0, %v1139_v38 }
 0x256   : > { %1140 = vrcp.f32 %v805_v39 }
 0x257   : > { %1142 = vrcp.f32 %v806_v40 }
 0x260   : > { %v1141_v44 = vpop.eup %1140 }
 0x261   : > { %v1143_v46 = vpop.eup %1142 }
 0x262   : > { %v811_v47 = vcombine.low %v1141_v44, %v1143_v46 }
 0x264   : > { %v818_v48 = vrot.slane %v811_v47, %v817_v45 }
 0x266   : > { %v825_v49 = vrot.slane %v818_v48, %v817_v45 }
 0x268   : > { %831 = vst.msk [vmem:[%s333_s17] sm:$0x3] %vm829_vm0, %v825_v49 }
 0x269   : > { %1217 = shalt.err (!%p1214_p0)
}
 0x26a   : > { %s1218_s23 = scalar_lea.hbm %s1601_s13, 32  ;;  %s1222_s18 = scalar_lea.hbm %s1651_s7, 128 }
 0x26b   : > { %p1219_p10 = scmp.ne.s32.totalorder %s1601_s13, %s1218_s23  ;;  %p1223_p3 = scmp.lt.u32.totalorder %s1601_s13, %s1651_s7 }
 0x26c   : > { %p1224_p9 = scmp.lt.u32.totalorder %s1222_s18, %s1218_s23  ;;  %p1226_p12 = scmp.lt.u32.totalorder %s1218_s23, %s1601_s13 }
 0x26d   : > { %p1220_p11 = pnand %p1219_p10, %p1664_p2 }
 0x26e   : > { %p1225_p6 = por %p1224_p9, %p1223_p3 }
 0x26f   : > { %p1221_p1 = pneg %p1220_p11 }
 0x270   : > { %p1227_p4 = por %p1226_p12, %p1225_p6 }
 0x272   : > { %p1228_p5 = pnand %p1227_p4, %p1221_p1 }
 0x274   : > { %1231 = shalt.err (!%p1228_p5)
}
 0x275   : > { %1083 = dma.vmem_to_hbm [thread:$0]  (%p1664_p2), %s1603_s12, 32, %s1601_s13, %s833_s22  }
 0x276 PF: > { %p1097_p7 = scmp.ge.s32.totalorder %s1274_s29, 2  ;;  %s859_s17 = sand.u32 1, %s1262_s26  }
 0x277   : > { %p1665_p8 = scmp.ne.s32.totalorder %s1657_s15, 0  ;;  %s860_s24 = scalar_lea.sflag [#allocation5], %s859_s17 }
 0x279   : > { %p1093_p13 = pnand %p1097_p7, %p1665_p8 }
 0x27b   : > { %1257 = dma.done.wait (!%p1093_p13), %s860_s24, 32  }
 0x27c   : > { %1259 = vsyncadd (!%p1093_p13), %s860_s24, 4294967264  ;;  %p24_p0 = scmp.ge.s32.totalorder %s1351_s8, 6   ;;  %s1666_s26 = smov %s1266_s27 }
 0x27d   : > { %s1667_s27 = smov %s1270_s28  ;;  %s1668_s28 = smov %s1363_s11 }
 0x27e   : > { %s1669_s29 = smov %s1351_s8  ;;  %26 = sbr.rel (!%p24_p0) target bundleno = 9 (0x9), region = 106 }
 0x285   :  { %865 = vsyncpa [#allocation4], 1 }
 0x286   :  { %867 = vsyncpa [#allocation4 + $0x1], 1 }
 0x287   :  { %868 = vsyncpa [#allocation7], 1 }
 0x288   :  { %870 = vsyncpa [#allocation7 + $0x1], 1 }
 0x289   :  { %871 = vsyncpa [#allocation5], 1 }
 0x28a   :  { %873 = vsyncpa [#allocation5 + $0x1], 1 }

</bundles_post_ra>
